<compile_context>
chip_gen: v7x
topology: tpu7x:2x2x1
jax: 0.10.0
libtpu: 0.0.40
codegen_flags: <defaults>
</compile_context>

<pallas_src>
import functools
import math

import jax
import jax.numpy as jnp
from jax.experimental import pallas as pl
from jax.experimental.pallas import tpu as pltpu

LANE = 128            # lane width
SUB = 8               # sublanes per vreg / per output partial block
MAX_ROW_TILE = 8192   # rows per input block (8192*128*4B = 4 MiB for f32 inputs)
VMEM_LIMIT = 32 * 1024 * 1024


def _round_up(x, m):
    return (x + m - 1) // m * m


def _plan(n_elems, max_row_tile):
    """Row layout for n_elems contiguous elements: (rows, row_tile, n_tiles)."""
    rows = _round_up(-(-n_elems // LANE), SUB)          # lane-dense rows, multiple of 8
    rt = min(rows, _round_up(max_row_tile, SUB))
    n_tiles = -(-rows // rt)
    return rows, rt, n_tiles


def _lane_view(flat, rows):
    """(..., n) -> (..., rows, LANE).  Free reshape when n == rows*LANE (common case
    for real image sizes); otherwise zero-pads the trailing axis (zeros add 0 to
    every sum, so correctness is unaffected)."""
    n = flat.shape[-1]
    total = rows * LANE
    if n != total:
        pad = [(0, 0)] * (flat.ndim - 1) + [(0, total - n)]
        flat = jnp.pad(flat, pad)
    return flat.reshape(flat.shape[:-1] + (rows, LANE))


# --------------------------------------------------------------------------- #
# Pallas kernels
# --------------------------------------------------------------------------- #
def _sse_kernel(pred_ref, gt_ref, psum_ref, *, rt, rows, needs_mask):
    """Accumulate sum((pred - gt)^2) for one batch element into (SUB, LANE) partials."""
    t = pl.program_id(1)

    @pl.when(t == 0)
    def _init():
        psum_ref[...] = jnp.zeros_like(psum_ref)

    # Widen in-kernel: HBM traffic stays in the native dtype (bf16/f32/...).
    d = pred_ref[...].astype(jnp.float32) - gt_ref[...].astype(jnp.float32)
    sq = d * d
    if needs_mask:  # ragged last row-tile: rows past the array are undefined
        row = jax.lax.broadcasted_iota(jnp.int32, (rt, LANE), 0)
        sq = jnp.where(row < (rows - t * rt), sq, 0.0)
    # Fold rows onto the 8 sublanes of the partial block: pure VPU vreg adds,
    # lane/sublane-dense stores (no masked vst).
    psum_ref[...] += jnp.sum(sq.reshape(-1, SUB, LANE), axis=0)


def _masked_sse_kernel(pred_ref, gt_ref, valid_ref, esum_ref, vsum_ref, *,
                       rt, rows, needs_mask, valid_per_channel):
    """Accumulate sum((pred-gt)^2 * valid) and sum(valid) per batch element.

    Grid is (B, hw_tiles, C); the small (B,1,H,W) mask block is reused across the
    innermost channel axis (never broadcast/materialized to pred's shape), and
    vsum is accumulated only on the channel-0 step unless the mask really has C
    channels."""
    t = pl.program_id(1)
    c = pl.program_id(2)

    @pl.when(jnp.logical_and(t == 0, c == 0))
    def _init():
        esum_ref[...] = jnp.zeros_like(esum_ref)
        vsum_ref[...] = jnp.zeros_like(vsum_ref)

    d = pred_ref[...].astype(jnp.float32) - gt_ref[...].astype(jnp.float32)
    v = valid_ref[...].astype(jnp.float32)
    e = d * d * v
    if needs_mask:
        row = jax.lax.broadcasted_iota(jnp.int32, (rt, LANE), 0)
        keep = row < (rows - t * rt)
        e = jnp.where(keep, e, 0.0)
        v = jnp.where(keep, v, 0.0)

    esum_ref[...] += jnp.sum(e.reshape(-1, SUB, LANE), axis=0)

    if valid_per_channel:
        vsum_ref[...] += jnp.sum(v.reshape(-1, SUB, LANE), axis=0)
    else:
        @pl.when(c == 0)
        def _vsum():
            vsum_ref[...] += jnp.sum(v.reshape(-1, SUB, LANE), axis=0)


# --------------------------------------------------------------------------- #
# pallas_call wrappers
# --------------------------------------------------------------------------- #
def batched_sse(pred, gt, *, max_row_tile=MAX_ROW_TILE):
    """Per-batch sum over all non-batch dims of (pred - gt)^2.  Returns (B,) f32."""
    b = pred.shape[0]
    n = math.prod(pred.shape[1:])
    rows, rt, n_tiles = _plan(n, max_row_tile)
    p = _lane_view(pred.reshape(b, n), rows)
    g = _lane_view(gt.reshape(b, n), rows)
    needs_mask = (rows % rt) != 0

    in_spec = pl.BlockSpec((None, rt, LANE), lambda bi, ti: (bi, ti, 0))
    out_spec = pl.BlockSpec((None, SUB, LANE), lambda bi, ti: (bi, 0, 0))
    kern = functools.partial(_sse_kernel, rt=rt, rows=rows, needs_mask=needs_mask)

    partials = pl.pallas_call(
        kern,
        out_shape=jax.ShapeDtypeStruct((b, SUB, LANE), jnp.float32),
        grid_spec=pltpu.PrefetchScalarGridSpec(
            num_scalar_prefetch=0,
            grid=(b, n_tiles),
            in_specs=[in_spec, in_spec],
            out_specs=out_spec,
        ),
        compiler_params=pltpu.CompilerParams(
            dimension_semantics=("parallel", "arbitrary"),
            vmem_limit_bytes=VMEM_LIMIT),
    )(p, g)
    return jnp.sum(partials, axis=(1, 2))


def batched_masked_sse(pred, gt, valid, *, max_row_tile=MAX_ROW_TILE):
    """Per-batch sum((pred-gt)^2 * valid) and sum(valid).

    valid has shape (B, 1, H, W) (broadcast over channels inside the kernel via
    the index_map) or (B, C, H, W).  Returns two (B,) f32 arrays."""
    b, c = pred.shape[0], pred.shape[1]
    hw = math.prod(pred.shape[2:])
    cv = valid.shape[1]
    rows, rt, n_tiles = _plan(hw, max_row_tile)

    p = _lane_view(pred.reshape(b, c, hw), rows)
    g = _lane_view(gt.reshape(b, c, hw), rows)
    # Mask stays tiny ((B, cv, H, W)); only cast, never broadcast to pred's shape.
    v = _lane_view(valid.astype(jnp.float32).reshape(b, cv, hw), rows)
    needs_mask = (rows % rt) != 0
    valid_per_channel = (cv == c)

    pg_spec = pl.BlockSpec((None, None, rt, LANE), lambda bi, ti, ci: (bi, ci, ti, 0))
    if valid_per_channel:
        v_spec = pl.BlockSpec((None, None, rt, LANE), lambda bi, ti, ci: (bi, ci, ti, 0))
    else:
        # Same mask block for every channel; c is the innermost grid axis so the
        # block index is unchanged across consecutive steps (no redundant DMA).
        v_spec = pl.BlockSpec((None, None, rt, LANE), lambda bi, ti, ci: (bi, 0, ti, 0))
    out_spec = pl.BlockSpec((None, SUB, LANE), lambda bi, ti, ci: (bi, 0, 0))

    kern = functools.partial(_masked_sse_kernel, rt=rt, rows=rows,
                             needs_mask=needs_mask,
                             valid_per_channel=valid_per_channel)

    esum, vsum = pl.pallas_call(
        kern,
        out_shape=(jax.ShapeDtypeStruct((b, SUB, LANE), jnp.float32),
                   jax.ShapeDtypeStruct((b, SUB, LANE), jnp.float32)),
        grid_spec=pltpu.PrefetchScalarGridSpec(
            num_scalar_prefetch=0,
            grid=(b, n_tiles, c),
            in_specs=[pg_spec, pg_spec, v_spec],
            out_specs=(out_spec, out_spec),
        ),
        compiler_params=pltpu.CompilerParams(
            dimension_semantics=("parallel", "arbitrary", "arbitrary"),
            vmem_limit_bytes=VMEM_LIMIT),
    )(p, g, v)
    return jnp.sum(esum, axis=(1, 2)), jnp.sum(vsum, axis=(1, 2))


# --------------------------------------------------------------------------- #
# PSNR forward (matches the PyTorch module)
# --------------------------------------------------------------------------- #
def psnr_forward(pred, gt, valid=None, *, boundary_ignore=None, max_value=1.0):
    assert pred.ndim == 4 and pred.shape == gt.shape
    bi = boundary_ignore
    if bi is not None:
        # TODO(synk): for large images the crop could be fused into the kernel
        # (row/col iota mask) to avoid materializing the sliced copies.
        pred = pred[..., bi:-bi, bi:-bi]
        gt = gt[..., bi:-bi, bi:-bi]
        if valid is not None:
            valid = valid[..., bi:-bi, bi:-bi]

    eps = 1e-12
    numel = math.prod(pred.shape[1:])

    if valid is None:
        sse = batched_sse(pred, gt)                               # (B,)
        mse = sse / float(numel)
    else:
        assert valid.ndim == 4 and valid.shape[0] == pred.shape[0]
        assert valid.shape[2:] == pred.shape[2:]
        assert valid.shape[1] in (1, pred.shape[1])
        elem_ratio = float(numel) / float(math.prod(valid.shape[1:]))
        esum, vsum = batched_masked_sse(pred, gt, valid)          # (B,), (B,)
        mse = esum / (vsum * elem_ratio + eps)

    psnr_b = 20.0 * math.log10(max_value) - 10.0 * jnp.log10(mse)  # per sample
    return jnp.mean(psnr_b)                                        # mean over batch


class PSNR:
    def __init__(self, boundary_ignore=None, max_value=1.0):
        self.boundary_ignore = boundary_ignore
        self.max_value = max_value

    def __call__(self, pred, gt, valid=None):
        return psnr_forward(pred, gt, valid,
                            boundary_ignore=self.boundary_ignore,
                            max_value=self.max_value)


# --------------------------------------------------------------------------- #
if __name__ == "__main__":
    key = jax.random.PRNGKey(0)
    k1, k2, k3, k4, k5, k6 = jax.random.split(key, 6)

    B, C, H, W = 2, 4, 16, 16
    pred = jax.random.uniform(k1, (B, C, H, W), jnp.float32)
    gt = jax.random.uniform(k2, (B, C, H, W), jnp.float32)
    valid = jax.random.uniform(k3, (B, 1, H, W), jnp.float32) > 0.3

    metric = PSNR(boundary_ignore=None, max_value=1.0)

    # --- valid=None path (module default) ---
    out = jax.block_until_ready(jax.jit(lambda p, g: metric(p, g))(pred, gt))
    mse_ref = jnp.mean((pred - gt) ** 2, axis=(1, 2, 3))
    psnr_ref = float(jnp.mean(20.0 * math.log10(1.0) - 10.0 * jnp.log10(mse_ref)))
    assert math.isfinite(float(out)), "non-finite PSNR"
    assert abs(float(out) - psnr_ref) <= 1e-3 * max(1.0, abs(psnr_ref)), \
        (float(out), psnr_ref)

    # --- valid-mask path (vsum from the UNBROADCAST mask, elem_ratio = C) ---
    out_v = jax.block_until_ready(
        jax.jit(lambda p, g, v: metric(p, g, v))(pred, gt, valid))
    err = (pred - gt) ** 2
    elem_ratio = err[0].size / valid[0].size
    vf = jnp.broadcast_to(valid.astype(jnp.float32), err.shape)
    mse_v = jnp.sum(err * vf, axis=(1, 2, 3)) / (
        jnp.sum(valid.astype(jnp.float32), axis=(1, 2, 3)) * elem_ratio + 1e-12)
    psnr_v_ref = float(jnp.mean(-10.0 * jnp.log10(mse_v)))
    assert abs(float(out_v) - psnr_v_ref) <= 1e-3 * max(1.0, abs(psnr_v_ref)), \
        (float(out_v), psnr_v_ref)

    # --- boundary_ignore path ---
    metric_bi = PSNR(boundary_ignore=2, max_value=1.0)
    out_bi = jax.block_until_ready(jax.jit(lambda p, g: metric_bi(p, g))(pred, gt))
    mse_bi = jnp.mean((pred[..., 2:-2, 2:-2] - gt[..., 2:-2, 2:-2]) ** 2,
                      axis=(1, 2, 3))
    psnr_bi_ref = float(jnp.mean(-10.0 * jnp.log10(mse_bi)))
    assert abs(float(out_bi) - psnr_bi_ref) <= 1e-3 * max(1.0, abs(psnr_bi_ref)), \
        (float(out_bi), psnr_bi_ref)

    # --- exercise multi-tile grid + ragged-tail mask + native bf16 streaming ---
    B2, C2, H2, W2 = 2, 3, 48, 64
    p2 = jax.random.uniform(k4, (B2, C2, H2, W2), jnp.bfloat16)
    g2 = jax.random.uniform(k5, (B2, C2, H2, W2), jnp.bfloat16)
    sse2 = jax.block_until_ready(
        jax.jit(functools.partial(batched_sse, max_row_tile=16))(p2, g2))
    sse2_ref = jnp.sum((p2.astype(jnp.float32) - g2.astype(jnp.float32)) ** 2,
                       axis=(1, 2, 3))
    assert jnp.allclose(sse2, sse2_ref, rtol=1e-3, atol=1e-3), (sse2, sse2_ref)

    v2 = jax.random.uniform(k6, (B2, 1, H2, W2), jnp.float32) > 0.5
    es2, vs2 = jax.block_until_ready(
        jax.jit(functools.partial(batched_masked_sse, max_row_tile=16))(p2, g2, v2))
    d2 = (p2.astype(jnp.float32) - g2.astype(jnp.float32)) ** 2
    es2_ref = jnp.sum(d2 * jnp.broadcast_to(v2.astype(jnp.float32), d2.shape),
                      axis=(1, 2, 3))
    vs2_ref = jnp.sum(v2.astype(jnp.float32), axis=(1, 2, 3))
    assert jnp.allclose(es2, es2_ref, rtol=1e-3, atol=1e-3), (es2, es2_ref)
    assert jnp.allclose(vs2, vs2_ref, rtol=1e-3, atol=1e-3), (vs2, vs2_ref)

    print("KERNEL_OK")
</pallas_src>

<mosaic_0001>
module attributes {stable_mosaic.version = 11 : i64} {
  func.func @_sse_kernel(%arg0: i32, %arg1: i32, %arg2: memref<1x8x128xf32, #tpu.memory_space<vmem>>, %arg3: memref<1x8x128xf32, #tpu.memory_space<vmem>>, %arg4: memref<1x8x128xf32, #tpu.memory_space<vmem>>) attributes {dimension_semantics = [#tpu.dimension_semantics<parallel>, #tpu.dimension_semantics<arbitrary>], iteration_bounds = array<i64: 2, 1>, scalar_prefetch = 0 : i64, scratch_operands = 0 : i64, tpu.core_type = #tpu.core_type<tc>, window_params = [{transform_indices = @transform_0, window_bounds = array<i64: 1, 8, 128>}, {transform_indices = @transform_1, window_bounds = array<i64: 1, 8, 128>}, {transform_indices = @transform_2, window_bounds = array<i64: 1, 8, 128>}]} {
    %c0_i32 = arith.constant 0 : i32
    %0 = arith.cmpi eq, %arg1, %c0_i32 : i32
    %1 = arith.extui %0 : i1 to i32
    %c0_i32_0 = arith.constant 0 : i32
    %2 = arith.cmpi ne, %1, %c0_i32_0 : i32
    scf.if %2 {
      %cst_12 = arith.constant 0.000000e+00 : f32
      %17 = vector.broadcast %cst_12 : f32 to vector<8x128xf32>
      %c0_13 = arith.constant 0 : index
      %c0_14 = arith.constant 0 : index
      %c0_15 = arith.constant 0 : index
      %18 = vector.load %arg4[%c0_13, %c0_14, %c0_15] : memref<1x8x128xf32, #tpu.memory_space<vmem>>, vector<1x8x128xf32>
      %19 = vector.shape_cast %18 : vector<1x8x128xf32> to vector<8x128xf32>
      %20 = vector.shape_cast %17 : vector<8x128xf32> to vector<1x8x128xf32>
      tpu.vector_store %arg4[%c0_13, %c0_14, %c0_15], %20 {strides = array<i32>} : memref<1x8x128xf32, #tpu.memory_space<vmem>>, vector<1x8x128xf32>,
    } else {
    }
    %c0 = arith.constant 0 : index
    %c0_1 = arith.constant 0 : index
    %c0_2 = arith.constant 0 : index
    %3 = vector.load %arg2[%c0, %c0_1, %c0_2] : memref<1x8x128xf32, #tpu.memory_space<vmem>>, vector<1x8x128xf32>
    %4 = vector.shape_cast %3 : vector<1x8x128xf32> to vector<8x128xf32>
    %c0_3 = arith.constant 0 : index
    %c0_4 = arith.constant 0 : index
    %c0_5 = arith.constant 0 : index
    %5 = vector.load %arg3[%c0_3, %c0_4, %c0_5] : memref<1x8x128xf32, #tpu.memory_space<vmem>>, vector<1x8x128xf32>
    %6 = vector.shape_cast %5 : vector<1x8x128xf32> to vector<8x128xf32>
    %7 = arith.subf %4, %6 : vector<8x128xf32>
    %8 = arith.mulf %7, %7 : vector<8x128xf32>
    %c0_6 = arith.constant 0 : index
    %c0_7 = arith.constant 0 : index
    %c0_8 = arith.constant 0 : index
    %9 = vector.load %arg4[%c0_6, %c0_7, %c0_8] : memref<1x8x128xf32, #tpu.memory_space<vmem>>, vector<1x8x128xf32>
    %10 = vector.shape_cast %9 : vector<1x8x128xf32> to vector<8x128xf32>
    %11 = vector.shape_cast %8 : vector<8x128xf32> to vector<1x8x128xf32>
    %cst = arith.constant dense<0.000000e+00> : vector<8x128xf32>
    %12 = vector.multi_reduction <add>, %11, %cst [0] : vector<1x8x128xf32> to vector<8x128xf32>
    %13 = arith.addf %10, %12 : vector<8x128xf32>
    %c0_9 = arith.constant 0 : index
    %c0_10 = arith.constant 0 : index
    %c0_11 = arith.constant 0 : index
    %14 = vector.load %arg4[%c0_9, %c0_10, %c0_11] : memref<1x8x128xf32, #tpu.memory_space<vmem>>, vector<1x8x128xf32>
    %15 = vector.shape_cast %14 : vector<1x8x128xf32> to vector<8x128xf32>
    %16 = vector.shape_cast %13 : vector<8x128xf32> to vector<1x8x128xf32>
    tpu.vector_store %arg4[%c0_9, %c0_10, %c0_11], %16 {strides = array<i32>} : memref<1x8x128xf32, #tpu.memory_space<vmem>>, vector<1x8x128xf32>,
    return
  }
  func.func @transform_0(%arg0: i32, %arg1: i32) -> (i32, i32, i32) {
    %c0_i32 = arith.constant 0 : i32
    %c0_i32_0 = arith.constant 0 : i32
    return %arg0, %arg1, %c0_i32 : i32, i32, i32
  }
  func.func @transform_1(%arg0: i32, %arg1: i32) -> (i32, i32, i32) {
    %c0_i32 = arith.constant 0 : i32
    %c0_i32_0 = arith.constant 0 : i32
    return %arg0, %arg1, %c0_i32 : i32, i32, i32
  }
  func.func @transform_2(%arg0: i32, %arg1: i32) -> (i32, i32, i32) {
    %c0_i32 = arith.constant 0 : i32
    %c0_i32_0 = arith.constant 0 : i32
    %c0_i32_1 = arith.constant 0 : i32
    return %arg0, %c0_i32, %c0_i32_0 : i32, i32, i32
  }
}

</mosaic_0001>

<bundles_post_ra>
// kernel: _lambda_.1
= control target key start
LH: loop header
LB: loop body
LE: loop exit
PB: predicated region body
PF: predicated region fallthrough
CT: control target
= control target key end

     0   :  { %s356_s9 = smov 0   ;;  %s358_s10 = smov 0   ;;  %s380_s0 = inlined_call_operand.vmem [shape: f32[2,8,128], index: 0, kind: input, shape index: {}]   ;;  %s381_s1 = inlined_call_operand.vmem [shape: f32[2,8,128], index: 1, kind: input, shape index: {}]   ;;  %s382_s2 = inlined_call_operand.vmem [shape: f32[2,8,128], index: 2, kind: output, shape index: {}]  }
   0x1   :  { %s360_s11 = smov 0  }
   0x2 LB: > { %s24_s12 = sadd.s32 1, %s335_s10  ;;  %p286_p0 = scmp.ge.s32.totalorder %s339_s11, 1  ;;  %s339_s11 = sphi %s360_s11, %s12_s11   ;;  %s335_s10 = sphi %s358_s10, %s384_s10   ;;  %s331_s9 = sphi %s356_s9, %s383_s9  }
   0x3   : > { %p26_p1 = scmp.ge.s32.totalorder %s24_s12, 2  ;;  %p142_p2 = scmp.lt.s32.totalorder %s339_s11, 3 }
   0x5   : > { %s386_s12 = smov (%p26_p1, %s24_s12), 0  ;;  %p143_p3 = pnand %p286_p0, %p142_p2 }
   0x6   : > { %p172_p4 = scmp.lt.s32.totalorder (!%p143_p3), %s331_s9, 1 }
   0x7   : > { %146 = sbr.rel (%p143_p3) target bundleno = 24 (0x18), region = 28 }
   0xe   : > { %s388_s9 = smov (!%p172_p4, %s331_s9), 1 }
   0xf   : > { %s287_s13 = sshll.u32 %s388_s9, 3 }
  0x10   : > { %s178_s16 = scalar_lea.vmem %s380_s0, %s287_s13  ;;  %s185_s19 = scalar_lea.vmem %s381_s1, %s287_s13 }
  0x11   : > { %v195_v0 = vld [vmem:[%s178_s16] sm:$0xff]  ;;  %s189_s22 = scalar_lea.vmem %s382_s2, %s287_s13 }
  0x12   : > { %v196_v1 = vld [vmem:[%s185_s19] sm:$0xff] }
  0x13   : > { %v197_v2 = vsub.f32 %v195_v0, %v196_v1 }
  0x15   : > { %v198_v3 = vmul.f32 %v197_v2, %v197_v2 }
  0x17   : > { %202 = vst [vmem:[%s189_s22] sm:$0xff] %v198_v3 }
  0x18 PF: > { %s12_s11 = sadd.s32 1, %s339_s11   ;;  %s383_s9 = smov %s335_s10 }
  0x19   : > { %p9_p5 = scmp.ge.s32.totalorder %s12_s11, 4   ;;  %s384_s10 = smov %s386_s12 }
  0x1b   :  { %11 = sbr.rel (!%p9_p5) target bundleno = 2 (0x2), region = 65 }

</bundles_post_ra>
